<compile_context>
chip_gen: v7x
topology: tpu7x:2x2x1
jax: 0.10.0
libtpu: 0.0.40
codegen_flags: <defaults>
</compile_context>

<pallas_src>
import jax
import jax.numpy as jnp
from jax.experimental import pallas as pl
from jax.experimental.pallas import tpu as pltpu

# ---------------- model dimensions (small, consistent with the module) -------
STATE_DIM = 8          # state_dim
STATE_TIME = 16        # state_time
ACTION_DIM = 4         # action_dim
COMP_DIM = 4           # comp_dim
HIDDEN = 20            # LSTM hidden size (fixed to 20 in the module)
BATCH = 3              # matches self.test_data = (3, state_time, state_dim)

T1 = STATE_TIME - 1    # conv1 output length (k=2, stride=1)      -> 15
P1 = T1 // 2           # max_pool1d(2) output length              -> 7
T2C = P1 - 1           # conv2 output length                      -> 6
T2 = T2C // 2          # max_pool1d(2) output length (LSTM batch) -> 3

S1_LEN = BATCH * STATE_TIME - 1   # 47  (all valid + junk conv1 rows, batched)
MM1_LEN = S1_LEN - 1              # 46  (pairwise-max rows, batched)
S2_LEN = BATCH * P1 - 1           # 20
MM2_LEN = S2_LEN - 1              # 19

# Lane layout of the single lane-dense output slab (BATCH, 128).
OUT_LANES = 128
_CMU0 = 0                                   # comp_mu          lanes 0:4
_CSG0 = COMP_DIM                            # comp_sigma       lanes 4:8
_MU0 = 2 * COMP_DIM                         # mu               lanes 8:12
_SG0 = 2 * COMP_DIM + ACTION_DIM            # sigma            lanes 12:16
_VAL0 = 2 * COMP_DIM + 2 * ACTION_DIM       # value            lane  16
_CSM0 = _VAL0 + 1                           # comp_sample      lanes 17:21

# Row layout of the packed (128, 128) parameter slab.
R_W1A, R_W1B, R_W2A, R_W2B = 0, 8, 16, 24   # conv taps, (D, D) each
R_WIH = 32                                  # (D, 4H)
R_WHH = 40                                  # (H, 4H)
R_B1, R_B2, R_BLSTM, R_BHEAD = 60, 61, 62, 63
R_WHEAD = 64                                # (H, 128)
R_WCP = 84                                  # (C, 128)
R_SEL1 = 88                                 # (B*P1, MM1_LEN) = (21, 46)
R_SEL2 = 112                                # (B*T2, MM2_LEN) = (9, 19)
PARAM_ROWS = 128


# ----------------------------- kernel helpers --------------------------------
def _softplus(x):
    # numerically stable softplus (PyTorch F.softplus, beta=1)
    return jnp.maximum(x, 0.0) + jnp.log(1.0 + jnp.exp(-jnp.abs(x)))


# --------------------------------- kernel ------------------------------------
def agent_kernel(x_ref, p_ref, noise_ref, out_ref):
    D, H, A, C, B = STATE_DIM, HIDDEN, ACTION_DIM, COMP_DIM, BATCH
    f32 = jnp.float32

    # Static slices of the packed parameter slab (index math is free).
    w1a = p_ref[R_W1A:R_W1A + D, 0:D]
    w1b = p_ref[R_W1B:R_W1B + D, 0:D]
    w2a = p_ref[R_W2A:R_W2A + D, 0:D]
    w2b = p_ref[R_W2B:R_W2B + D, 0:D]
    wih = p_ref[R_WIH:R_WIH + D, 0:4 * H]
    whh = p_ref[R_WHH:R_WHH + H, 0:4 * H]
    b1 = p_ref[R_B1:R_B1 + 1, 0:D]
    b2 = p_ref[R_B2:R_B2 + 1, 0:D]
    blstm = p_ref[R_BLSTM:R_BLSTM + 1, 0:4 * H]
    b_head = p_ref[R_BHEAD:R_BHEAD + 1, :]
    w_head = p_ref[R_WHEAD:R_WHEAD + H, :]
    wcp = p_ref[R_WCP:R_WCP + C, :]
    sel1 = p_ref[R_SEL1:R_SEL1 + B * P1, 0:MM1_LEN]
    sel2 = p_ref[R_SEL2:R_SEL2 + B * T2, 0:MM2_LEN]

    x_all = x_ref[...]                                       # (B*T, D)

    # ---- Conv1d #1 (k=2, stride=1), batched across B; then max_pool1d(2) ----
    # (bias commutes with the pairwise max, so it is added once after pooling)
    ya = jnp.dot(x_all, w1a, preferred_element_type=f32)     # (48, D)
    yb = jnp.dot(x_all, w1b, preferred_element_type=f32)     # (48, D)
    s1 = ya[0:S1_LEN, :] + yb[1:S1_LEN + 1, :]               # (47, D)
    mm1 = jnp.maximum(s1[0:MM1_LEN, :], s1[1:MM1_LEN + 1, :])  # (46, D)
    p1 = jnp.dot(sel1, mm1, preferred_element_type=f32) + b1   # (21, D)

    # ---- Conv1d #2 + max_pool1d(2), same batched scheme ----------------------
    za = jnp.dot(p1, w2a, preferred_element_type=f32)        # (21, D)
    zb = jnp.dot(p1, w2b, preferred_element_type=f32)
    s2 = za[0:S2_LEN, :] + zb[1:S2_LEN + 1, :]               # (20, D)
    mm2 = jnp.maximum(s2[0:MM2_LEN, :], s2[1:MM2_LEN + 1, :])  # (19, D)
    p2 = jnp.dot(sel2, mm2, preferred_element_type=f32) + b2   # (9, D)

    # ---- LSTM input projection for all (seq, lstm-batch) pairs, up front ----
    gx = jnp.dot(p2, wih, preferred_element_type=f32) + blstm  # (9, 4H)

    # ---- serial LSTM recurrence (sequence axis == original batch axis) ------
    # Gates are packed as [i | f | o | g]: one sigmoid + one tanh per step.
    h = jnp.zeros((T2, H), f32)
    c = jnp.zeros((T2, H), f32)
    last_rows = []
    for b in range(B):
        gates = (gx[T2 * b:T2 * (b + 1), :]
                 + jnp.dot(h, whh, preferred_element_type=f32))      # (T2, 4H)
        sig = 1.0 / (1.0 + jnp.exp(-gates[:, 0:3 * H]))              # i | f | o
        g = jnp.tanh(gates[:, 3 * H:4 * H])
        c = sig[:, H:2 * H] * c + sig[:, 0:H] * g
        h = sig[:, 2 * H:3 * H] * jnp.tanh(c)
        # out[0][:, -1, :] -> hidden of last LSTM-"batch" element per step
        last_rows.append(h[T2 - 1:T2, :])
    l_out = jnp.concatenate(last_rows, axis=0)               # (B, H)

    # ---- fused heads: one (H,128) matmul yields the lane-dense output slab --
    # lanes: [comp_mu | comp_sigma_pre | mu_h | sigma_pre_h | value | 0...]
    head = jnp.dot(l_out, w_head, preferred_element_type=f32) + b_head  # (B,128)

    comp_mu = head[:, _CMU0:_CMU0 + C]
    comp_sigma = _softplus(head[:, _CSG0:_CSG0 + C]) + 0.001
    # Normal(mu, sigma).sample() via reparameterization with precomputed eps
    comp_sample = comp_mu + comp_sigma * noise_ref[...]

    # comp_sample-dependent contributions (a_m/a_s tails) plus a pass-through
    # of comp_sample into its own output lanes, as 4 VPU broadcast-FMAs.
    comp_part = (comp_sample[:, 0:1] * wcp[0:1, :]
                 + comp_sample[:, 1:2] * wcp[1:2, :]
                 + comp_sample[:, 2:3] * wcp[2:3, :]
                 + comp_sample[:, 3:4] * wcp[3:4, :])        # (B, 128)
    pre = head + comp_part

    # Masked softplus(+0.001) on the two sigma lane segments; everything else
    # is already final. Single unmasked lane-dense store / single output DMA.
    lane = jax.lax.broadcasted_iota(jnp.int32, (B, OUT_LANES), 1)
    sp_mask = (((lane >= _CSG0) & (lane < _CSG0 + C))
               | ((lane >= _SG0) & (lane < _SG0 + A)))
    out_ref[...] = jnp.where(sp_mask, _softplus(pre) + 0.001, pre)


# --------------------------------- wrapper ------------------------------------
@jax.jit
def agent_forward(x, param_slab, noise):
    x_flat = x.reshape(BATCH * STATE_TIME, STATE_DIM)        # free metadata reshape
    vmem = lambda: pl.BlockSpec(memory_space=pltpu.MemorySpace.VMEM)
    slab = pl.pallas_call(
        agent_kernel,
        out_shape=jax.ShapeDtypeStruct((BATCH, OUT_LANES), jnp.float32),
        in_specs=[vmem(), vmem(), vmem()],
        out_specs=vmem(),
    )(x_flat, param_slab, noise)

    mu = slab[:, _MU0:_MU0 + ACTION_DIM]
    sigma = slab[:, _SG0:_SG0 + ACTION_DIM]
    value = slab[:, _VAL0:_VAL0 + 1]
    comp_mu = slab[:, _CMU0:_CMU0 + COMP_DIM]
    comp_sigma = slab[:, _CSG0:_CSG0 + COMP_DIM]
    comp_sample = slab[:, _CSM0:_CSM0 + COMP_DIM]
    # comp_act stays a device scalar (no .item()/host sync in the hot path).
    comp_act = jnp.argmax(comp_sample[0]).astype(jnp.int32)
    return mu, sigma, value, comp_mu, comp_sigma, comp_sample, comp_act


# ----------------------- deterministic parameter setup -----------------------
def _uniform(key, shape, fan_in):
    bound = 1.0 / jnp.sqrt(jnp.float32(fan_in))
    return jax.random.uniform(key, shape, jnp.float32, -bound, bound)


def init_raw_params(key):
    """PyTorch-layout parameters (Conv1d (out,in,k), LSTM (4H,*) i,f,g,o, Linear (out,in))."""
    ks = list(jax.random.split(key, 18))
    D, H, A, C = STATE_DIM, HIDDEN, ACTION_DIM, COMP_DIM
    return dict(
        w1=_uniform(ks[0], (D, D, 2), D * 2), b1=_uniform(ks[1], (D,), D * 2),
        w2=_uniform(ks[2], (D, D, 2), D * 2), b2=_uniform(ks[3], (D,), D * 2),
        wih=_uniform(ks[4], (4 * H, D), H), whh=_uniform(ks[5], (4 * H, H), H),
        bih=_uniform(ks[6], (4 * H,), H), bhh=_uniform(ks[7], (4 * H,), H),
        wcm=_uniform(ks[8], (C, H), H), bcm=_uniform(ks[9], (C,), H),
        wcs=_uniform(ks[10], (C, H), H), bcs=_uniform(ks[11], (C,), H),
        wam=_uniform(ks[12], (A, H + C), H + C), bam=_uniform(ks[13], (A,), H + C),
        was=_uniform(ks[14], (A, H + C), H + C), bas=_uniform(ks[15], (A,), H + C),
        wcv=_uniform(ks[16], (1, H), H), bcv=_uniform(ks[17], (1,), H),
    )


def _pool_selector(num_b, per_b, stride_b, cols):
    # sel[b*per_b + p, b*stride_b + 2p] = 1  — selects pooled rows out of the
    # batched pairwise-max tensor, skipping cross-batch junk rows.
    r = jnp.arange(num_b * per_b)
    col = (r // per_b) * stride_b + 2 * (r % per_b)
    return (col[:, None] == jnp.arange(cols)[None, :]).astype(jnp.float32)


def pack_params(raw):
    """Pack everything into one lane-dense (128,128) f32 slab (3 input DMAs total)."""
    D, H, A, C = STATE_DIM, HIDDEN, ACTION_DIM, COMP_DIM

    def reorder_gates(w):   # torch gate order (i,f,g,o) -> kernel order (i,f,o,g)
        return jnp.concatenate([w[0:H], w[H:2 * H], w[3 * H:4 * H], w[2 * H:3 * H]], axis=0)

    wih_k = reorder_gates(raw["wih"]).T                       # (D, 4H)
    whh_k = reorder_gates(raw["whh"]).T                       # (H, 4H)
    blstm_k = reorder_gates((raw["bih"] + raw["bhh"])[:, None])[:, 0]   # (4H,)

    # Head weights pre-laid-out to the 128-lane output slab layout.
    w_head = jnp.zeros((H, OUT_LANES), jnp.float32)
    w_head = w_head.at[:, _CMU0:_CMU0 + C].set(raw["wcm"].T)
    w_head = w_head.at[:, _CSG0:_CSG0 + C].set(raw["wcs"].T)
    w_head = w_head.at[:, _MU0:_MU0 + A].set(raw["wam"][:, :H].T)
    w_head = w_head.at[:, _SG0:_SG0 + A].set(raw["was"][:, :H].T)
    w_head = w_head.at[:, _VAL0:_VAL0 + 1].set(raw["wcv"].T)

    b_head = jnp.zeros((OUT_LANES,), jnp.float32)
    b_head = b_head.at[_CMU0:_CMU0 + C].set(raw["bcm"])
    b_head = b_head.at[_CSG0:_CSG0 + C].set(raw["bcs"])
    b_head = b_head.at[_MU0:_MU0 + A].set(raw["bam"])
    b_head = b_head.at[_SG0:_SG0 + A].set(raw["bas"])
    b_head = b_head.at[_VAL0].set(raw["bcv"][0])

    # comp_sample-dependent weights at matching lane offsets + identity block
    # that drops comp_sample into its own output lanes.
    wcp = jnp.zeros((C, OUT_LANES), jnp.float32)
    wcp = wcp.at[:, _MU0:_MU0 + A].set(raw["wam"][:, H:].T)
    wcp = wcp.at[:, _SG0:_SG0 + A].set(raw["was"][:, H:].T)
    wcp = wcp.at[:, _CSM0:_CSM0 + C].set(jnp.eye(C, dtype=jnp.float32))

    sel1 = _pool_selector(BATCH, P1, STATE_TIME, MM1_LEN)     # (21, 46)
    sel2 = _pool_selector(BATCH, T2, P1, MM2_LEN)             # (9, 19)

    slab = jnp.zeros((PARAM_ROWS, OUT_LANES), jnp.float32)

    def put(s, r, a):
        a = jnp.asarray(a, jnp.float32)
        if a.ndim == 1:
            a = a[None, :]
        return s.at[r:r + a.shape[0], 0:a.shape[1]].set(a)

    slab = put(slab, R_W1A, raw["w1"][:, :, 0].T)   # conv taps as (in, out)
    slab = put(slab, R_W1B, raw["w1"][:, :, 1].T)
    slab = put(slab, R_W2A, raw["w2"][:, :, 0].T)
    slab = put(slab, R_W2B, raw["w2"][:, :, 1].T)
    slab = put(slab, R_WIH, wih_k)
    slab = put(slab, R_WHH, whh_k)
    slab = put(slab, R_B1, raw["b1"])
    slab = put(slab, R_B2, raw["b2"])
    slab = put(slab, R_BLSTM, blstm_k)
    slab = put(slab, R_BHEAD, b_head)
    slab = put(slab, R_WHEAD, w_head)
    slab = put(slab, R_WCP, wcp)
    slab = put(slab, R_SEL1, sel1)
    slab = put(slab, R_SEL2, sel2)
    return slab


# ---------------------- pure-JAX reference (correctness) ---------------------
def reference_forward(x, raw, noise):
    H = HIDDEN

    def conv_k2(y, w, b):     # y: (L, D) time-major; w: (out, in, 2) torch layout
        return (jnp.einsum("ti,oi->to", y[:-1], w[:, :, 0])
                + jnp.einsum("ti,oi->to", y[1:], w[:, :, 1]) + b)

    def pool2(y):             # max_pool1d(kernel=2, stride=2) over time
        n = y.shape[0] // 2
        return jnp.maximum(y[0:2 * n:2], y[1:2 * n:2])

    feats = []
    for bi in range(BATCH):
        y = pool2(conv_k2(x[bi], raw["w1"], raw["b1"]))
        y = pool2(conv_k2(y, raw["w2"], raw["b2"]))
        feats.append(y)
    seq = jnp.stack(feats, axis=0)           # (B, T2, D) fed to LSTM as (seq, batch, feat)

    h = jnp.zeros((T2, H), jnp.float32)
    c = jnp.zeros((T2, H), jnp.float32)
    hs = []
    for s in range(BATCH):
        gates = seq[s] @ raw["wih"].T + h @ raw["whh"].T + raw["bih"] + raw["bhh"]
        i_g = jax.nn.sigmoid(gates[:, 0:H])
        f_g = jax.nn.sigmoid(gates[:, H:2 * H])
        g_g = jnp.tanh(gates[:, 2 * H:3 * H])
        o_g = jax.nn.sigmoid(gates[:, 3 * H:4 * H])
        c = f_g * c + i_g * g_g
        h = o_g * jnp.tanh(c)
        hs.append(h)
    l_out = jnp.stack(hs, axis=0)[:, -1, :]  # out[0][:, -1, :]

    comp_mu = l_out @ raw["wcm"].T + raw["bcm"]
    comp_sigma = jax.nn.softplus(l_out @ raw["wcs"].T + raw["bcs"]) + 0.001
    comp_sample = comp_mu + comp_sigma * noise
    cat = jnp.concatenate([l_out, comp_sample], axis=1)
    mu = cat @ raw["wam"].T + raw["bam"]
    sigma = jax.nn.softplus(cat @ raw["was"].T + raw["bas"]) + 0.001
    value = l_out @ raw["wcv"].T + raw["bcv"]
    return mu, sigma, value, comp_mu, comp_sigma, comp_sample


if __name__ == "__main__":
    key = jax.random.PRNGKey(0)
    k_param, k_x, k_noise = jax.random.split(key, 3)

    raw = init_raw_params(k_param)
    param_slab = pack_params(raw)            # built once; reusable across calls
    x = jax.random.normal(k_x, (BATCH, STATE_TIME, STATE_DIM), jnp.float32)
    noise = jax.random.normal(k_noise, (BATCH, COMP_DIM), jnp.float32)  # eps for .sample()

    outs = agent_forward(x, param_slab, noise)
    jax.block_until_ready(outs)
    mu, sigma, value, comp_mu, comp_sigma, comp_sample, comp_act = outs

    assert mu.shape == (BATCH, ACTION_DIM)
    assert sigma.shape == (BATCH, ACTION_DIM)
    assert value.shape == (BATCH, 1)
    assert comp_mu.shape == (BATCH, COMP_DIM)
    assert comp_sigma.shape == (BATCH, COMP_DIM)
    assert comp_sample.shape == (BATCH, COMP_DIM)
    assert bool(jnp.all(sigma > 0.0)) and bool(jnp.all(comp_sigma > 0.0))
    assert 0 <= int(comp_act) < COMP_DIM     # one-time host read, outside the hot path

    # Cross-check against a straightforward pure-JAX reference (tolerance
    # covers f32-matmul precision-path differences between XLA and Mosaic).
    r_mu, r_sg, r_val, r_cmu, r_csg, r_csm = reference_forward(x, raw, noise)
    for got, want in ((mu, r_mu), (sigma, r_sg), (value, r_val),
                      (comp_mu, r_cmu), (comp_sigma, r_csg), (comp_sample, r_csm)):
        assert bool(jnp.allclose(got, want, rtol=2e-2, atol=2e-2))

    print("KERNEL_OK")
</pallas_src>

<mosaic_0001>
module attributes {stable_mosaic.version = 11 : i64} {
  func.func @agent_kernel(%arg0: memref<48x8xf32, #tpu.memory_space<vmem>>, %arg1: memref<128x128xf32, #tpu.memory_space<vmem>>, %arg2: memref<3x4xf32, #tpu.memory_space<vmem>>, %arg3: memref<3x128xf32, #tpu.memory_space<vmem>>) attributes {dimension_semantics = [], scalar_prefetch = 0 : i64, scratch_operands = 0 : i64, tpu.core_type = #tpu.core_type<tc>} {
    %c0 = arith.constant 0 : index
    %c0_0 = arith.constant 0 : index
    %0 = vector.load %arg1[%c0, %c0_0] : memref<128x128xf32, #tpu.memory_space<vmem>>, vector<8x8xf32>
    %c8 = arith.constant 8 : index
    %c0_1 = arith.constant 0 : index
    %1 = vector.load %arg1[%c8, %c0_1] : memref<128x128xf32, #tpu.memory_space<vmem>>, vector<8x8xf32>
    %c16 = arith.constant 16 : index
    %c0_2 = arith.constant 0 : index
    %2 = vector.load %arg1[%c16, %c0_2] : memref<128x128xf32, #tpu.memory_space<vmem>>, vector<8x8xf32>
    %c24 = arith.constant 24 : index
    %c0_3 = arith.constant 0 : index
    %3 = vector.load %arg1[%c24, %c0_3] : memref<128x128xf32, #tpu.memory_space<vmem>>, vector<8x8xf32>
    %c32 = arith.constant 32 : index
    %c0_4 = arith.constant 0 : index
    %4 = vector.load %arg1[%c32, %c0_4] : memref<128x128xf32, #tpu.memory_space<vmem>>, vector<8x80xf32>
    %c40 = arith.constant 40 : index
    %c0_5 = arith.constant 0 : index
    %5 = vector.load %arg1[%c40, %c0_5] : memref<128x128xf32, #tpu.memory_space<vmem>>, vector<20x80xf32>
    %c60 = arith.constant 60 : index
    %c0_6 = arith.constant 0 : index
    %6 = vector.load %arg1[%c60, %c0_6] : memref<128x128xf32, #tpu.memory_space<vmem>>, vector<1x8xf32>
    %c61 = arith.constant 61 : index
    %c0_7 = arith.constant 0 : index
    %7 = vector.load %arg1[%c61, %c0_7] : memref<128x128xf32, #tpu.memory_space<vmem>>, vector<1x8xf32>
    %c62 = arith.constant 62 : index
    %c0_8 = arith.constant 0 : index
    %8 = vector.load %arg1[%c62, %c0_8] : memref<128x128xf32, #tpu.memory_space<vmem>>, vector<1x80xf32>
    %c63 = arith.constant 63 : index
    %c0_9 = arith.constant 0 : index
    %9 = vector.load %arg1[%c63, %c0_9] : memref<128x128xf32, #tpu.memory_space<vmem>>, vector<1x128xf32>
    %c64 = arith.constant 64 : index
    %c0_10 = arith.constant 0 : index
    %10 = vector.load %arg1[%c64, %c0_10] : memref<128x128xf32, #tpu.memory_space<vmem>>, vector<20x128xf32>
    %c84 = arith.constant 84 : index
    %c0_11 = arith.constant 0 : index
    %11 = vector.load %arg1[%c84, %c0_11] : memref<128x128xf32, #tpu.memory_space<vmem>>, vector<4x128xf32>
    %c88 = arith.constant 88 : index
    %c0_12 = arith.constant 0 : index
    %12 = vector.load %arg1[%c88, %c0_12] : memref<128x128xf32, #tpu.memory_space<vmem>>, vector<21x46xf32>
    %c112 = arith.constant 112 : index
    %c0_13 = arith.constant 0 : index
    %13 = vector.load %arg1[%c112, %c0_13] : memref<128x128xf32, #tpu.memory_space<vmem>>, vector<9x19xf32>
    %c0_14 = arith.constant 0 : index
    %c0_15 = arith.constant 0 : index
    %14 = vector.load %arg0[%c0_14, %c0_15] : memref<48x8xf32, #tpu.memory_space<vmem>>, vector<48x8xf32>
    %cst = arith.constant dense<0.000000e+00> : vector<48x8xf32>
    %15 = tpu.matmul %14, %0, %cst {dimension_numbers = #tpu.dot_dimension_numbers<[1], [0], [0], [1], [0, 0, 1, 1], [], []>} : vector<48x8xf32>, vector<8x8xf32>, vector<48x8xf32> -> vector<48x8xf32>
    %cst_16 = arith.constant dense<0.000000e+00> : vector<48x8xf32>
    %16 = tpu.matmul %14, %1, %cst_16 {dimension_numbers = #tpu.dot_dimension_numbers<[1], [0], [0], [1], [0, 0, 1, 1], [], []>} : vector<48x8xf32>, vector<8x8xf32>, vector<48x8xf32> -> vector<48x8xf32>
    %17 = vector.extract_strided_slice %15 {offsets = [0, 0], sizes = [47, 8], strides = [1, 1]} : vector<48x8xf32> to vector<47x8xf32>
    %18 = vector.extract_strided_slice %16 {offsets = [1, 0], sizes = [47, 8], strides = [1, 1]} : vector<48x8xf32> to vector<47x8xf32>
    %19 = arith.addf %17, %18 : vector<47x8xf32>
    %20 = vector.extract_strided_slice %19 {offsets = [0, 0], sizes = [46, 8], strides = [1, 1]} : vector<47x8xf32> to vector<46x8xf32>
    %21 = vector.extract_strided_slice %19 {offsets = [1, 0], sizes = [46, 8], strides = [1, 1]} : vector<47x8xf32> to vector<46x8xf32>
    %22 = arith.maximumf %20, %21 : vector<46x8xf32>
    %cst_17 = arith.constant dense<0.000000e+00> : vector<21x8xf32>
    %23 = tpu.matmul %12, %22, %cst_17 {dimension_numbers = #tpu.dot_dimension_numbers<[1], [0], [0], [1], [0, 0, 1, 1], [], []>} : vector<21x46xf32>, vector<46x8xf32>, vector<21x8xf32> -> vector<21x8xf32>
    %24 = vector.broadcast %6 : vector<1x8xf32> to vector<21x8xf32>
    %25 = arith.addf %23, %24 : vector<21x8xf32>
    %cst_18 = arith.constant dense<0.000000e+00> : vector<21x8xf32>
    %26 = tpu.matmul %25, %2, %cst_18 {dimension_numbers = #tpu.dot_dimension_numbers<[1], [0], [0], [1], [0, 0, 1, 1], [], []>} : vector<21x8xf32>, vector<8x8xf32>, vector<21x8xf32> -> vector<21x8xf32>
    %cst_19 = arith.constant dense<0.000000e+00> : vector<21x8xf32>
    %27 = tpu.matmul %25, %3, %cst_19 {dimension_numbers = #tpu.dot_dimension_numbers<[1], [0], [0], [1], [0, 0, 1, 1], [], []>} : vector<21x8xf32>, vector<8x8xf32>, vector<21x8xf32> -> vector<21x8xf32>
    %28 = vector.extract_strided_slice %26 {offsets = [0, 0], sizes = [20, 8], strides = [1, 1]} : vector<21x8xf32> to vector<20x8xf32>
    %29 = vector.extract_strided_slice %27 {offsets = [1, 0], sizes = [20, 8], strides = [1, 1]} : vector<21x8xf32> to vector<20x8xf32>
    %30 = arith.addf %28, %29 : vector<20x8xf32>
    %31 = vector.extract_strided_slice %30 {offsets = [0, 0], sizes = [19, 8], strides = [1, 1]} : vector<20x8xf32> to vector<19x8xf32>
    %32 = vector.extract_strided_slice %30 {offsets = [1, 0], sizes = [19, 8], strides = [1, 1]} : vector<20x8xf32> to vector<19x8xf32>
    %33 = arith.maximumf %31, %32 : vector<19x8xf32>
    %cst_20 = arith.constant dense<0.000000e+00> : vector<9x8xf32>
    %34 = tpu.matmul %13, %33, %cst_20 {dimension_numbers = #tpu.dot_dimension_numbers<[1], [0], [0], [1], [0, 0, 1, 1], [], []>} : vector<9x19xf32>, vector<19x8xf32>, vector<9x8xf32> -> vector<9x8xf32>
    %35 = vector.broadcast %7 : vector<1x8xf32> to vector<9x8xf32>
    %36 = arith.addf %34, %35 : vector<9x8xf32>
    %cst_21 = arith.constant dense<0.000000e+00> : vector<9x80xf32>
    %37 = tpu.matmul %36, %4, %cst_21 {dimension_numbers = #tpu.dot_dimension_numbers<[1], [0], [0], [1], [0, 0, 1, 1], [], []>} : vector<9x8xf32>, vector<8x80xf32>, vector<9x80xf32> -> vector<9x80xf32>
    %38 = vector.broadcast %8 : vector<1x80xf32> to vector<9x80xf32>
    %39 = arith.addf %37, %38 : vector<9x80xf32>
    %cst_22 = arith.constant 0.000000e+00 : f32
    %40 = vector.broadcast %cst_22 : f32 to vector<3x20xf32>
    %cst_23 = arith.constant 0.000000e+00 : f32
    %41 = vector.broadcast %cst_23 : f32 to vector<3x20xf32>
    %42 = vector.extract_strided_slice %39 {offsets = [0, 0], sizes = [3, 80], strides = [1, 1]} : vector<9x80xf32> to vector<3x80xf32>
    %cst_24 = arith.constant dense<0.000000e+00> : vector<3x80xf32>
    %43 = tpu.matmul %40, %5, %cst_24 {dimension_numbers = #tpu.dot_dimension_numbers<[1], [0], [0], [1], [0, 0, 1, 1], [], []>} : vector<3x20xf32>, vector<20x80xf32>, vector<3x80xf32> -> vector<3x80xf32>
    %44 = arith.addf %42, %43 : vector<3x80xf32>
    %45 = vector.extract_strided_slice %44 {offsets = [0, 0], sizes = [3, 60], strides = [1, 1]} : vector<3x80xf32> to vector<3x60xf32>
    %cst_25 = arith.constant 0.000000e+00 : f32
    %46 = vector.broadcast %cst_25 : f32 to vector<3x60xf32>
    %47 = arith.subf %46, %45 : vector<3x60xf32>
    %48 = math.exp %47 : vector<3x60xf32>
    %cst_26 = arith.constant 1.000000e+00 : f32
    %49 = vector.broadcast %cst_26 : f32 to vector<3x60xf32>
    %50 = arith.addf %49, %48 : vector<3x60xf32>
    %cst_27 = arith.constant 1.000000e+00 : f32
    %51 = vector.broadcast %cst_27 : f32 to vector<3x60xf32>
    %52 = arith.divf %51, %50 : vector<3x60xf32>
    %53 = vector.extract_strided_slice %44 {offsets = [0, 60], sizes = [3, 20], strides = [1, 1]} : vector<3x80xf32> to vector<3x20xf32>
    %54 = math.tanh %53 : vector<3x20xf32>
    %55 = vector.extract_strided_slice %52 {offsets = [0, 20], sizes = [3, 20], strides = [1, 1]} : vector<3x60xf32> to vector<3x20xf32>
    %56 = arith.mulf %55, %41 : vector<3x20xf32>
    %57 = vector.extract_strided_slice %52 {offsets = [0, 0], sizes = [3, 20], strides = [1, 1]} : vector<3x60xf32> to vector<3x20xf32>
    %58 = arith.mulf %57, %54 : vector<3x20xf32>
    %59 = arith.addf %56, %58 : vector<3x20xf32>
    %60 = vector.extract_strided_slice %52 {offsets = [0, 40], sizes = [3, 20], strides = [1, 1]} : vector<3x60xf32> to vector<3x20xf32>
    %61 = math.tanh %59 : vector<3x20xf32>
    %62 = arith.mulf %60, %61 : vector<3x20xf32>
    %63 = vector.extract_strided_slice %62 {offsets = [2, 0], sizes = [1, 20], strides = [1, 1]} : vector<3x20xf32> to vector<1x20xf32>
    %64 = vector.extract_strided_slice %39 {offsets = [3, 0], sizes = [3, 80], strides = [1, 1]} : vector<9x80xf32> to vector<3x80xf32>
    %cst_28 = arith.constant dense<0.000000e+00> : vector<3x80xf32>
    %65 = tpu.matmul %62, %5, %cst_28 {dimension_numbers = #tpu.dot_dimension_numbers<[1], [0], [0], [1], [0, 0, 1, 1], [], []>} : vector<3x20xf32>, vector<20x80xf32>, vector<3x80xf32> -> vector<3x80xf32>
    %66 = arith.addf %64, %65 : vector<3x80xf32>
    %67 = vector.extract_strided_slice %66 {offsets = [0, 0], sizes = [3, 60], strides = [1, 1]} : vector<3x80xf32> to vector<3x60xf32>
    %cst_29 = arith.constant 0.000000e+00 : f32
    %68 = vector.broadcast %cst_29 : f32 to vector<3x60xf32>
    %69 = arith.subf %68, %67 : vector<3x60xf32>
    %70 = math.exp %69 : vector<3x60xf32>
    %cst_30 = arith.constant 1.000000e+00 : f32
    %71 = vector.broadcast %cst_30 : f32 to vector<3x60xf32>
    %72 = arith.addf %71, %70 : vector<3x60xf32>
    %cst_31 = arith.constant 1.000000e+00 : f32
    %73 = vector.broadcast %cst_31 : f32 to vector<3x60xf32>
    %74 = arith.divf %73, %72 : vector<3x60xf32>
    %75 = vector.extract_strided_slice %66 {offsets = [0, 60], sizes = [3, 20], strides = [1, 1]} : vector<3x80xf32> to vector<3x20xf32>
    %76 = math.tanh %75 : vector<3x20xf32>
    %77 = vector.extract_strided_slice %74 {offsets = [0, 20], sizes = [3, 20], strides = [1, 1]} : vector<3x60xf32> to vector<3x20xf32>
    %78 = arith.mulf %77, %59 : vector<3x20xf32>
    %79 = vector.extract_strided_slice %74 {offsets = [0, 0], sizes = [3, 20], strides = [1, 1]} : vector<3x60xf32> to vector<3x20xf32>
    %80 = arith.mulf %79, %76 : vector<3x20xf32>
    %81 = arith.addf %78, %80 : vector<3x20xf32>
    %82 = vector.extract_strided_slice %74 {offsets = [0, 40], sizes = [3, 20], strides = [1, 1]} : vector<3x60xf32> to vector<3x20xf32>
    %83 = math.tanh %81 : vector<3x20xf32>
    %84 = arith.mulf %82, %83 : vector<3x20xf32>
    %85 = vector.extract_strided_slice %84 {offsets = [2, 0], sizes = [1, 20], strides = [1, 1]} : vector<3x20xf32> to vector<1x20xf32>
    %86 = vector.extract_strided_slice %39 {offsets = [6, 0], sizes = [3, 80], strides = [1, 1]} : vector<9x80xf32> to vector<3x80xf32>
    %cst_32 = arith.constant dense<0.000000e+00> : vector<3x80xf32>
    %87 = tpu.matmul %84, %5, %cst_32 {dimension_numbers = #tpu.dot_dimension_numbers<[1], [0], [0], [1], [0, 0, 1, 1], [], []>} : vector<3x20xf32>, vector<20x80xf32>, vector<3x80xf32> -> vector<3x80xf32>
    %88 = arith.addf %86, %87 : vector<3x80xf32>
    %89 = vector.extract_strided_slice %88 {offsets = [0, 0], sizes = [3, 60], strides = [1, 1]} : vector<3x80xf32> to vector<3x60xf32>
    %cst_33 = arith.constant 0.000000e+00 : f32
    %90 = vector.broadcast %cst_33 : f32 to vector<3x60xf32>
    %91 = arith.subf %90, %89 : vector<3x60xf32>
    %92 = math.exp %91 : vector<3x60xf32>
    %cst_34 = arith.constant 1.000000e+00 : f32
    %93 = vector.broadcast %cst_34 : f32 to vector<3x60xf32>
    %94 = arith.addf %93, %92 : vector<3x60xf32>
    %cst_35 = arith.constant 1.000000e+00 : f32
    %95 = vector.broadcast %cst_35 : f32 to vector<3x60xf32>
    %96 = arith.divf %95, %94 : vector<3x60xf32>
    %97 = vector.extract_strided_slice %88 {offsets = [0, 60], sizes = [3, 20], strides = [1, 1]} : vector<3x80xf32> to vector<3x20xf32>
    %98 = math.tanh %97 : vector<3x20xf32>
    %99 = vector.extract_strided_slice %96 {offsets = [0, 20], sizes = [3, 20], strides = [1, 1]} : vector<3x60xf32> to vector<3x20xf32>
    %100 = arith.mulf %99, %81 : vector<3x20xf32>
    %101 = vector.extract_strided_slice %96 {offsets = [0, 0], sizes = [3, 20], strides = [1, 1]} : vector<3x60xf32> to vector<3x20xf32>
    %102 = arith.mulf %101, %98 : vector<3x20xf32>
    %103 = arith.addf %100, %102 : vector<3x20xf32>
    %104 = vector.extract_strided_slice %96 {offsets = [0, 40], sizes = [3, 20], strides = [1, 1]} : vector<3x60xf32> to vector<3x20xf32>
    %105 = math.tanh %103 : vector<3x20xf32>
    %106 = arith.mulf %104, %105 : vector<3x20xf32>
    %107 = vector.extract_strided_slice %106 {offsets = [2, 0], sizes = [1, 20], strides = [1, 1]} : vector<3x20xf32> to vector<1x20xf32>
    %108 = tpu.concatenate %63, %85, %107 in 0 : vector<1x20xf32>, vector<1x20xf32>, vector<1x20xf32> -> vector<3x20xf32>
    %cst_36 = arith.constant dense<0.000000e+00> : vector<3x128xf32>
    %109 = tpu.matmul %108, %10, %cst_36 {dimension_numbers = #tpu.dot_dimension_numbers<[1], [0], [0], [1], [0, 0, 1, 1], [], []>} : vector<3x20xf32>, vector<20x128xf32>, vector<3x128xf32> -> vector<3x128xf32>
    %110 = vector.broadcast %9 : vector<1x128xf32> to vector<3x128xf32>
    %111 = arith.addf %109, %110 : vector<3x128xf32>
    %112 = vector.extract_strided_slice %111 {offsets = [0, 0], sizes = [3, 4], strides = [1, 1]} : vector<3x128xf32> to vector<3x4xf32>
    %113 = vector.extract_strided_slice %111 {offsets = [0, 4], sizes = [3, 4], strides = [1, 1]} : vector<3x128xf32> to vector<3x4xf32>
    %cst_37 = arith.constant 0.000000e+00 : f32
    %114 = vector.broadcast %cst_37 : f32 to vector<3x4xf32>
    %115 = arith.maximumf %113, %114 : vector<3x4xf32>
    %116 = math.absf %113 : vector<3x4xf32>
    %cst_38 = arith.constant 0.000000e+00 : f32
    %117 = vector.broadcast %cst_38 : f32 to vector<3x4xf32>
    %118 = arith.subf %117, %116 : vector<3x4xf32>
    %119 = math.exp %118 : vector<3x4xf32>
    %cst_39 = arith.constant 1.000000e+00 : f32
    %120 = vector.broadcast %cst_39 : f32 to vector<3x4xf32>
    %121 = arith.addf %120, %119 : vector<3x4xf32>
    %122 = math.log %121 : vector<3x4xf32>
    %123 = arith.addf %115, %122 : vector<3x4xf32>
    %cst_40 = arith.constant 1.000000e-03 : f32
    %124 = vector.broadcast %cst_40 : f32 to vector<3x4xf32>
    %125 = arith.addf %123, %124 : vector<3x4xf32>
    %c0_41 = arith.constant 0 : index
    %c0_42 = arith.constant 0 : index
    %126 = vector.load %arg2[%c0_41, %c0_42] : memref<3x4xf32, #tpu.memory_space<vmem>>, vector<3x4xf32>
    %127 = arith.mulf %125, %126 : vector<3x4xf32>
    %128 = arith.addf %112, %127 : vector<3x4xf32>
    %129 = vector.extract_strided_slice %128 {offsets = [0, 0], sizes = [3, 1], strides = [1, 1]} : vector<3x4xf32> to vector<3x1xf32>
    %130 = vector.extract_strided_slice %11 {offsets = [0, 0], sizes = [1, 128], strides = [1, 1]} : vector<4x128xf32> to vector<1x128xf32>
    %131 = vector.broadcast %129 : vector<3x1xf32> to vector<3x128xf32>
    %132 = vector.broadcast %130 : vector<1x128xf32> to vector<3x128xf32>
    %133 = arith.mulf %131, %132 : vector<3x128xf32>
    %134 = vector.extract_strided_slice %128 {offsets = [0, 1], sizes = [3, 1], strides = [1, 1]} : vector<3x4xf32> to vector<3x1xf32>
    %135 = vector.extract_strided_slice %11 {offsets = [1, 0], sizes = [1, 128], strides = [1, 1]} : vector<4x128xf32> to vector<1x128xf32>
    %136 = vector.broadcast %134 : vector<3x1xf32> to vector<3x128xf32>
    %137 = vector.broadcast %135 : vector<1x128xf32> to vector<3x128xf32>
    %138 = arith.mulf %136, %137 : vector<3x128xf32>
    %139 = arith.addf %133, %138 : vector<3x128xf32>
    %140 = vector.extract_strided_slice %128 {offsets = [0, 2], sizes = [3, 1], strides = [1, 1]} : vector<3x4xf32> to vector<3x1xf32>
    %141 = vector.extract_strided_slice %11 {offsets = [2, 0], sizes = [1, 128], strides = [1, 1]} : vector<4x128xf32> to vector<1x128xf32>
    %142 = vector.broadcast %140 : vector<3x1xf32> to vector<3x128xf32>
    %143 = vector.broadcast %141 : vector<1x128xf32> to vector<3x128xf32>
    %144 = arith.mulf %142, %143 : vector<3x128xf32>
    %145 = arith.addf %139, %144 : vector<3x128xf32>
    %146 = vector.extract_strided_slice %128 {offsets = [0, 3], sizes = [3, 1], strides = [1, 1]} : vector<3x4xf32> to vector<3x1xf32>
    %147 = vector.extract_strided_slice %11 {offsets = [3, 0], sizes = [1, 128], strides = [1, 1]} : vector<4x128xf32> to vector<1x128xf32>
    %148 = vector.broadcast %146 : vector<3x1xf32> to vector<3x128xf32>
    %149 = vector.broadcast %147 : vector<1x128xf32> to vector<3x128xf32>
    %150 = arith.mulf %148, %149 : vector<3x128xf32>
    %151 = arith.addf %145, %150 : vector<3x128xf32>
    %152 = arith.addf %111, %151 : vector<3x128xf32>
    %153 = tpu.iota {dimensions = array<i32: 1>} : vector<3x128xi32>
    %c4_i32 = arith.constant 4 : i32
    %154 = vector.broadcast %c4_i32 : i32 to vector<3x128xi32>
    %155 = arith.cmpi sge, %153, %154 : vector<3x128xi32>
    %c8_i32 = arith.constant 8 : i32
    %156 = vector.broadcast %c8_i32 : i32 to vector<3x128xi32>
    %157 = arith.cmpi slt, %153, %156 : vector<3x128xi32>
    %158 = arith.andi %155, %157 : vector<3x128xi1>
    %c12_i32 = arith.constant 12 : i32
    %159 = vector.broadcast %c12_i32 : i32 to vector<3x128xi32>
    %160 = arith.cmpi sge, %153, %159 : vector<3x128xi32>
    %c16_i32 = arith.constant 16 : i32
    %161 = vector.broadcast %c16_i32 : i32 to vector<3x128xi32>
    %162 = arith.cmpi slt, %153, %161 : vector<3x128xi32>
    %163 = arith.andi %160, %162 : vector<3x128xi1>
    %164 = arith.ori %158, %163 : vector<3x128xi1>
    %cst_43 = arith.constant 0.000000e+00 : f32
    %165 = vector.broadcast %cst_43 : f32 to vector<3x128xf32>
    %166 = arith.maximumf %152, %165 : vector<3x128xf32>
    %167 = math.absf %152 : vector<3x128xf32>
    %cst_44 = arith.constant 0.000000e+00 : f32
    %168 = vector.broadcast %cst_44 : f32 to vector<3x128xf32>
    %169 = arith.subf %168, %167 : vector<3x128xf32>
    %170 = math.exp %169 : vector<3x128xf32>
    %cst_45 = arith.constant 1.000000e+00 : f32
    %171 = vector.broadcast %cst_45 : f32 to vector<3x128xf32>
    %172 = arith.addf %171, %170 : vector<3x128xf32>
    %173 = math.log %172 : vector<3x128xf32>
    %174 = arith.addf %166, %173 : vector<3x128xf32>
    %cst_46 = arith.constant 1.000000e-03 : f32
    %175 = vector.broadcast %cst_46 : f32 to vector<3x128xf32>
    %176 = arith.addf %174, %175 : vector<3x128xf32>
    %177 = arith.select %164, %176, %152 : vector<3x128xi1>, vector<3x128xf32>
    %c0_47 = arith.constant 0 : index
    %c0_48 = arith.constant 0 : index
    %178 = vector.load %arg3[%c0_47, %c0_48] : memref<3x128xf32, #tpu.memory_space<vmem>>, vector<3x128xf32>
    tpu.vector_store %arg3[%c0_47, %c0_48], %177 {strides = array<i32>} : memref<3x128xf32, #tpu.memory_space<vmem>>, vector<3x128xf32>,
    return
  }
}

</mosaic_0001>

<bundles_post_ra>
// kernel: agent_forward.1
= control target key start
LH: loop header
LB: loop body
LE: loop exit
PB: predicated region body
PF: predicated region fallthrough
CT: control target
= control target key end

     0   :  { %8 = vsyncpa [#allocation3], 0  ;;  %s1600_s12 = smov [#allocation2]   ;;  %s1770_s0 = inlined_call_operand.vmem [shape: f32[48,8], index: 0, kind: input, shape index: {}]   ;;  %s1771_s1 = inlined_call_operand.hbm [shape: f32[128,128], index: 1, kind: input, shape index: {}]   ;;  %s1772_s2 = inlined_call_operand.vmem [shape: f32[3,4], index: 2, kind: input, shape index: {}]   ;;  %s1773_s3 = inlined_call_operand.vmem [shape: f32[3,128], index: 3, kind: output, shape index: {}]  }
   0x1   :  { %s16_s13 = sshll.u32 %s1600_s12, 4  ;;  %s1576_s16 = scalar_lea.hbm %s1771_s1, 2048  ;;  %s17_s13 = int_to_ptr.vmem [resolvable:$true] %s16_s13 }
   0x2   :  { %p1577_p0 = scmp.ne.s32.totalorder %s1771_s1, %s1576_s16  ;;  %p1580_p1 = scmp.lt.u32.totalorder %s1576_s16, %s1771_s1 }
   0x4   :  { %p1582_p2 = pnand %p1580_p1, %p1577_p0 }
   0x6   :  { %1585 = shalt.err (!%p1582_p2)
}
   0x7   :  { %s1586_s21 = scalar_lea.vmem %s17_s13, 2048  ;;  %p1591_p4 = scmp.lt.s32.totalorder %s17_s13, %s17_s13 }
   0x8   :  { %p1587_p3 = scmp.ne.s32.totalorder %s17_s13, %s1586_s21  ;;  %p1592_p5 = scmp.lt.s32.totalorder %s1586_s21, %s1586_s21 }
   0xa   :  { %p1593_p6 = por %p1592_p5, %p1591_p4 }
   0xc   :  { %p1594_p7 = pnand %p1593_p6, %p1587_p3 }
   0xe   :  { %1597 = shalt.err (!%p1594_p7)
}
   0xf   :  { %s1601_s22 = smov 128   ;;  %s1602_s23 = smov 8  }
  0x10   :  { %22 = dma.hbm_to_vmem [thread:$0]  %s1771_s1, 2048, %s17_s13, [#allocation3], %s1601_s22, %s1601_s22, %s1602_s23  }
  0x11   :  { %1598 = dma.done.wait [#allocation3], 2048  }
  0x12   :  { %1599 = vsyncadd [#allocation3], 4294965248  ;;  %vm55_vm0 = vcmask 64512   ;;  %v29_v0 = vld [vmem:[#allocation2 + $0x8] sm:$0xff]  ;;  %v49_v1 = vld [vmem:[%s1770_s0] sm:$0xff]  ;;  %v1603_v8 = vmov 0.0|0.0  }
  0x13   :  { %v28_v2 = vld [vmem:[#allocation2] sm:$0xff]  ;;  %1394 = vmatprep.subr.mxu1 %v29_v0  ;;  %1396 = vmatprep.mubr.msk.f32.mxu1 %vm55_vm0, %v49_v1  ;;  %v51_v4 = vld [vmem:[%s1770_s0 + $0x10] sm:$0xff]  ;;  %v52_v5 = vld [vmem:[%s1770_s0 + $0x18] sm:$0xff]  ;;  %vm1604_vm1 = vmmov 0   ;;  %v1605_v9 = vmov 0.0   ;;  %vm270_vm2 = vcmask 1046528  }
  0x14   :  { %v50_v3 = vld [vmem:[%s1770_s0 + $0x8] sm:$0xff]  ;;  %1395 = vmatpush3.msra.mxu1 %v29_v0  ;;  %1383 = vmatprep.subr.mxu0 %v28_v2  ;;  %v53_v6 = vld [vmem:[%s1770_s0 + $0x20] sm:$0xff]  ;;  %vm337_vm3 = vcmask 1045504   ;;  %vm1606_vm4 = vmmov 1   ;;  %vm327_vm6 = vcmask 375808   ;;  %v30_v63 = vld [vmem:[#allocation2 + $0x10] sm:$0xff] }
  0x15   :  { %1397 = vmatmul.mubr.msk.f32.vlgmr.msra.gmra.mrb[0].mxu1 %vm55_vm0, %v50_v3  ;;  %1384 = vmatpush3.msra.mxu0 %v28_v2  ;;  %v54_v7 = vld [vmem:[%s1770_s0 + $0x28] sm:$0xff]  ;;  %vm1506_vm5 = vmpackc.low %vm337_vm3, %vm1606_vm4  ;;  %v44_v59 = vld [vmem:[#allocation2 + $0x58] sm:$0xff]  ;;  %vm622_vm7 = vcmask 154624   ;;  %vm629_vm8 = vcmask 1042432   ;;  %vm797_vm9 = vcmask 1043456   ;;  %s1607_s0 = smov 68  }
  0x16   :  { %1385 = vmatprep.mubr.msk.f32.mxu0 %vm55_vm0, %v49_v1  ;;  %1399 = vmatprep.mubr.msk.f32.mxu1 %vm55_vm0, %v51_v4  ;;  %v31_v60 = vld [vmem:[#allocation2 + $0x18] sm:$0xff]  ;;  %v45_v61 = vld [vmem:[#allocation2 + $0x60] sm:$0xff]  ;;  %v46_v62 = vld [vmem:[#allocation2 + $0x68] sm:$0x1f]  ;;  %s1608_s10 = smov 20   ;;  %s1609_s11 = smov 88  }
  0x17   :  { %1386 = vmatmul.mubr.msk.f32.vlgmr.msra.gmra.mrb[0].mxu0 %vm55_vm0, %v50_v3  ;;  %1498 = vmatprep.subr.bf16.mxu0 %v1603_v8  ;;  %v1302_v0 = vld [vmem:[#allocation2 + $0x3c] ss:$0 sm:$0xff]  ;;  %vm793_vm10 = vcmask 162816   ;;  %vm1116_vm11 = vcmask 1040384   ;;  %s1610_s14 = smov 4   ;;  %vm1118_vm12 = vcmask 1041408  }
  0x18   :  { %1388 = vmatprep.mubr.msk.f32.mxu0 %vm55_vm0, %v51_v4  ;;  %1426 = vmatprep.subr.mxu1 %v1605_v9 }
  0x19   :  { %1400 = vmatmul.mubr.msk.f32.gmra.mrb[2].mxu1 %vm55_vm0, %v52_v5 }
  0x1a   :  { %1402 = vmatprep.mubr.msk.f32.mxu1 %vm55_vm0, %v53_v6  ;;  %1427 = vmatpush3.msra.mxu1 %v30_v63 }
  0x1b   :  { %1389 = vmatmul.mubr.msk.f32.gmra.mrb[2].mxu0 %vm55_vm0, %v52_v5 }
  0x1c   :  { %1391 = vmatprep.mubr.msk.f32.mxu0 %vm55_vm0, %v53_v6 }
  0x1d   :  { %1403 = vmatmul.mubr.msk.f32.gmra.mrb[4].mxu1 %vm55_vm0, %v54_v7 }
  0x1e   :  { %1428 = vmatprep.mubr.msk.f32.mxu1 %vm1604_vm1, %v1605_v9 }
  0x1f   :  { %1392 = vmatmul.mubr.msk.f32.gmra.mrb[4].mxu0 %vm55_vm0, %v54_v7 }
  0x20   :  { %1417 = vmatprep.mubr.msk.f32.mxu0 %vm1604_vm1, %v1605_v9 }
  0xe8   :  { %v1398_v10 = vpop.f32.mrb[0].mxu1 }
  0xe9   :  { %v272_v11 = vrot.slane %v1398_v10, 1  ;;  %v235_v12 = vpop.f32.mrb[1].mxu1 }
  0xea   :  { %v271_v13 = vrot.slane %v235_v12, 1  ;;  %v1387_v14 = vpop.f32.mrb[0].mxu0  ;;  %v47_v12 = vld [vmem:[#allocation2 + $0x70] sm:$0xff] }
  0xeb   :  { %v140_v15 = vpop.f32.mrb[1].mxu0 }
  0xec   :  { %v273_v16 = vsel %vm270_vm2, %v271_v13, %v272_v11  ;;  %v1401_v17 = vpop.f32.mrb[2].mxu1 }
  0xed   :  { %v288_v18 = vadd.f32 %v273_v16, %v140_v15  ;;  %v276_v19 = vrot.slane %v1401_v17, 1  ;;  %v245_v20 = vpop.f32.mrb[3].mxu1 }
  0xee   :  { %v274_v21 = vrot.slane %v245_v20, 1  ;;  %v1390_v22 = vpop.f32.mrb[2].mxu0 }
  0xef   :  { %v150_v23 = vpop.f32.mrb[3].mxu0  ;;  %v300_v37 = vrot.slane %v288_v18, 1 }
  0xf0   :  { %v275_v24 = vsel %vm270_vm2, %v272_v11, %v274_v21  ;;  %v277_v25 = vsel %vm270_vm2, %v274_v21, %v276_v19  ;;  %v1404_v26 = vpop.f32.mrb[4].mxu1 }
  0xf1   :  { %v289_v27 = vadd.f32 %v1387_v14, %v275_v24  ;;  %v290_v28 = vadd.f32 %v277_v25, %v150_v23  ;;  %v280_v29 = vrot.slane %v1404_v26, 1  ;;  %v255_v30 = vpop.f32.mrb[5].mxu1 }
  0xf2   :  { %v278_v31 = vrot.slane %v255_v30, 1  ;;  %v1393_v32 = vpop.f32.mrb[4].mxu0 }
  0xf3   :  { %v301_v33 = vrot.slane %v289_v27, 1  ;;  %v303_v34 = vrot.slane %v290_v28, 1  ;;  %v293_v35 = vadd.f32 %v1393_v32, %v280_v29  ;;  %v160_v36 = vpop.f32.mrb[5].mxu0 }
  0xf4   :  { %v279_v38 = vsel %vm270_vm2, %v276_v19, %v278_v31  ;;  %v281_v39 = vsel %vm270_vm2, %v278_v31, %v280_v29 }
  0xf5   :  { %v304_v40 = vsel %vm270_vm2, %v301_v33, %v303_v34  ;;  %v291_v41 = vadd.f32 %v1390_v22, %v279_v38  ;;  %v292_v42 = vadd.f32 %v281_v39, %v160_v36  ;;  %v309_v44 = vrot.slane %v293_v35, 1 }
  0xf6   :  { %v318_v43 = vmax.f32 %v289_v27, %v304_v40  ;;  %v302_v45 = vsel %vm270_vm2, %v300_v37, %v301_v33 }
  0xf7   :  { %v305_v46 = vrot.slane %v291_v41, 1  ;;  %v307_v47 = vrot.slane %v292_v42, 1  ;;  %v317_v48 = vmax.f32 %v288_v18, %v302_v45  ;;  %v322_v53 = vmax.f32 %v293_v35, %v309_v44  ;;  %v34_v45 = vld [vmem:[#allocation2 + $0x30] sm:$0xff] }
  0xf9   :  { %v308_v49 = vsel %vm270_vm2, %v305_v46, %v307_v47  ;;  %v310_v50 = vsel %vm270_vm2, %v307_v47, %v309_v44  ;;  %v1499_v51 = vpack.c.bf16 %v318_v43, %v317_v48  ;;  %v306_v52 = vsel %vm270_vm2, %v303_v34, %v305_v46  ;;  %v32_v43 = vld [vmem:[#allocation2 + $0x20] sm:$0xff]  ;;  %v33_v44 = vld [vmem:[#allocation2 + $0x28] sm:$0xff]  ;;  %v35_v47 = vld [vmem:[#allocation2 + $0x38] sm:$0xf] }
  0xfa   :  { %v320_v54 = vmax.f32 %v291_v41, %v308_v49  ;;  %v321_v55 = vmax.f32 %v292_v42, %v310_v50  ;;  %v319_v56 = vmax.f32 %v290_v28, %v306_v52  ;;  %v48_v42 = vld [vmem:[#allocation2 + $0x78] sm:$0x1]  ;;  %v1513_v46 = vpack.c.bf16 %v34_v45, %v33_v44  ;;  %v1313_v48 = vld [vmem:[#allocation2 + $0x3d] ss:$0 sm:$0xff] }
  0xfb   :  { %1500 = vmatpush3.bf16.msra.mxu0 %v1499_v51 }
  0xfc   :  { %v1505_v57 = vpack.c.bf16 %v322_v53, %v321_v55  ;;  %1501 = vmatprep.subr.bf16.mxu0 %v1603_v8  ;;  %v1502_v58 = vpack.c.bf16 %v320_v54, %v319_v56  ;;  %v1317_v53 = vld [vmem:[#allocation2 + $0x3e] ss:$0 sm:$0xff] }
  0xff   :  { %1503 = vmatpush3.bf16.msra.mxu0 %v1502_v58 }
 0x100   :  { %1504 = vmatprep.subr.bf16.mxu0 %v1603_v8 }
 0x103   :  { %1507 = vmatpush3.bf16.msk.msra.mxu0 %vm1506_vm5, %v1505_v57 }
 0x104   :  { %1437 = vmatprep.subr.mxu0 %v1605_v9 }
 0x106   :  { %1418 = vmatmul.mubr.msk.f32.vlgmr.msra.gmra.mrb[6].mxu0 %vm327_vm6, %v44_v59 }
 0x107   :  { %1420 = vmatprep.mubr.msk.f32.mxu0 %vm1604_vm1, %v1605_v9  ;;  %1438 = vmatpush3.msra.mxu0 %v31_v60 }
 0x108   :  { %1515 = vmatprep.subr.bf16.mxu0 %v1603_v8 }
 0x10a   :  { %1421 = vmatmul.mubr.msk.f32.gmra.mrb[8].mxu0 %vm327_vm6, %v45_v61 }
 0x10b   :  { %1423 = vmatprep.mubr.msk.f32.mxu0 %vm1604_vm1, %v1605_v9 }
 0x10e   :  { %1424 = vmatmul.mubr.msk.f32.gmra.mrb[10].mxu0 %vm327_vm6, %v46_v62 }
 0x10f   :  { %1439 = vmatprep.mubr.msk.f32.mxu0 %vm1604_vm1, %v1605_v9 }
 0x1d9   :  { %v407_v1 = vpop.f32.mrb[6].mxu0 }
 0x1da   :  { %v408_v2 = vadd.f32 %v1302_v0, %v407_v1  ;;  %v1419_v3 = vpop.f32.mrb[7].mxu0 }
 0x1dc   :  { %1429 = vmatmul.mubr.msk.f32.vlgmr.msra.gmra.mrb[6].mxu1 %vm55_vm0, %v408_v2  ;;  %1440 = vmatmul.mubr.msk.f32.vlgmr.msra.gmra.mrb[12].mxu0 %vm55_vm0, %v408_v2 }
 0x1dd   :  { %v412_v4 = vpop.f32.mrb[8].mxu0  ;;  %1431 = vmatprep.mubr.msk.f32.mxu1 %vm1604_vm1, %v1605_v9  ;;  %1442 = vmatprep.mubr.msk.f32.mxu0 %vm1604_vm1, %v1605_v9 }
 0x1de   :  { %v413_v5 = vadd.f32 %v1302_v0, %v412_v4  ;;  %v1422_v6 = vpop.f32.mrb[9].mxu0  ;;  %1517 = vmatpush3.bf16.msra.mxu0 %v1513_v46 }
 0x1df   :  { %1475 = vmatprep.subr.mxu0 %v1605_v9 }
 0x1e0   :  { %1432 = vmatmul.mubr.msk.f32.gmra.mrb[8].mxu1 %vm55_vm0, %v413_v5  ;;  %1443 = vmatmul.mubr.msk.f32.gmra.mrb[14].mxu0 %vm55_vm0, %v413_v5 }
 0x1e1   :  { %v417_v7 = vpop.f32.mrb[10].mxu0  ;;  %1434 = vmatprep.mubr.msk.f32.mxu1 %vm1604_vm1, %v1605_v9  ;;  %1445 = vmatprep.mubr.msk.f32.mxu0 %vm1604_vm1, %v1605_v9 }
 0x1e2   :  { %v418_v10 = vadd.f32 %v1302_v0, %v417_v7  ;;  %v1425_v11 = vpop.f32.mrb[11].mxu0  ;;  %1476 = vmatpush3.msk.msra.mxu0 %vm797_vm9, %v35_v47 }
 0x1e3   :  { %1521 = vmatprep.subr.bf16.mxu0 %v1603_v8 }
 0x1e4   :  { %1435 = vmatmul.mubr.msk.f32.gmra.mrb[10].mxu1 %vm55_vm0, %v418_v10  ;;  %1446 = vmatmul.mubr.msk.f32.gmra.mrb[16].mxu0 %vm55_vm0, %v418_v10 }
 0x1e5   :  { %1477 = vmatprep.mubr.msk.f32.mxu0 %vm1604_vm1, %v1605_v9  ;;  %1454 = vmatprep.mubr.msk.f32.mxu1 %vm622_vm7, %v47_v12 }
 0x2af   :  { %v496_v13 = vpop.f32.mrb[6].mxu1  ;;  %v576_v14 = vpop.f32.mrb[12].mxu0 }
 0x2b0   :  { %v1430_v15 = vpop.f32.mrb[7].mxu1  ;;  %v1441_v16 = vpop.f32.mrb[13].mxu0  ;;  %v593_v19 = vrot.slane %v576_v14, 1 }
 0x2b3   :  { %v501_v17 = vpop.f32.mrb[8].mxu1  ;;  %v581_v18 = vpop.f32.mrb[14].mxu0 }
 0x2b4   :  { %v594_v20 = vrot.slane %v581_v18, 1  ;;  %v1433_v21 = vpop.f32.mrb[9].mxu1  ;;  %v1444_v22 = vpop.f32.mrb[15].mxu0 }
 0x2b6   :  { %v595_v23 = vsel %vm270_vm2, %v593_v19, %v594_v20 }
 0x2b7   :  { %v601_v24 = vadd.f32 %v595_v23, %v496_v13  ;;  %v506_v25 = vpop.f32.mrb[10].mxu1  ;;  %v586_v26 = vpop.f32.mrb[16].mxu0 }
 0x2b8   :  { %v596_v27 = vrot.slane %v586_v26, 1  ;;  %v1436_v28 = vpop.f32.mrb[11].mxu1  ;;  %v1447_v29 = vpop.f32.mrb[17].mxu0 }
 0x2b9   :  { %v607_v34 = vrot.slane %v601_v24, 1 }
 0x2ba   :  { %v597_v30 = vsel %vm270_vm2, %v594_v20, %v596_v27  ;;  %v603_v31 = vadd.f32 %v596_v27, %v506_v25 }
 0x2bb   :  { %v602_v32 = vadd.f32 %v597_v30, %v501_v17 }
 0x2bc   :  { %v610_v33 = vrot.slane %v603_v31, 1 }
 0x2bd   :  { %v608_v35 = vrot.slane %v602_v32, 1 }
 0x2be   :  { %v617_v41 = vmax.f32 %v603_v31, %v610_v33 }
 0x2bf   :  { %v609_v36 = vsel %vm270_vm2, %v607_v34, %v608_v35  ;;  %v611_v37 = vsel %vm270_vm2, %v608_v35, %v610_v33 }
 0x2c0   :  { %v615_v38 = vmax.f32 %v601_v24, %v609_v36  ;;  %v616_v39 = vmax.f32 %v602_v32, %v611_v37 }
 0x2c2   :  { %v1508_v40 = vpack.c.bf16 %v616_v39, %v615_v38 }
 0x2c4   :  { %1509 = vmatprep.subr.bf16.mxu1 %v1508_v40 }
 0x2c5   :  { %1511 = vmatpush3.bf16.msra.mxu1 %v1508_v40 }
 0x2c6   :  { %1452 = vmatprep.subr.msk.mxu1 %vm629_vm8, %v617_v41 }
 0x2c9   :  { %1453 = vmatpush3.msk.msra.mxu1 %vm629_vm8, %v617_v41 }
 0x2ca   :  { %1455 = vmatmul.mubr.msk.f32.vlgmr.msra.gmra.mrb[12].mxu1 %vm622_vm7, %v48_v42  ;;  %1457 = vmatprep.subr.mxu1 %v32_v43 }
 0x2cb   :  { %1458 = vmatpush3.msra.mxu1 %v32_v43 }
 0x2cc   :  { %1512 = vmatprep.subr.bf16.mxu1 %v1603_v8 }
 0x39d   :  { %v1456_v49 = vpop.f32.mrb[12].mxu1 }
 0x39e   :  { %v699_v50 = vpop.f32.mrb[13].mxu1  ;;  %v705_v52 = vadd.f32 %v1456_v49, %v1313_v48 }
 0x39f   :  { %v700_v51 = vadd.f32 %v1313_v48, %v699_v50 }
 0x3a1   :  { %1459 = vmatprep.mubr.msk.f32.mxu1 %vm55_vm0, %v700_v51 }
 0x3a2   :  { %1460 = vmatmul.mubr.msk.f32.vlgmr.msra.gmra.mrb[14].mxu1 %vm55_vm0, %v705_v52 }
 0x3a3   :  { %1514 = vmatpush3.bf16.msra.mxu1 %v1513_v46  ;;  %1468 = vmatprep.mubr.msk.f32.mxu1 %vm1604_vm1, %v1605_v9 }
 0x3a4   :  { %1466 = vmatprep.subr.mxu1 %v1605_v9 }
 0x3a7   :  { %1467 = vmatpush3.msk.msra.mxu1 %vm797_vm9, %v35_v47 }
 0x3a8   :  { %1469 = vmatmul.mubr.f32.vlgmr.msra.gmra.mrb[16].mxu1 %v1605_v9  ;;  %1518 = vmatprep.subr.bf16.mxu1 %v1603_v8 }
 0x3a9   :  { %1520 = vmatpush3.bf16.msra.mxu1 %v1513_v46  ;;  %1486 = vmatprep.mubr.msk.f32.mxu1 %vm1604_vm1, %v1605_v9 }
 0x3aa   :  { %1484 = vmatprep.subr.mxu1 %v1605_v9 }
 0x3ad   :  { %1485 = vmatpush3.msk.msra.mxu1 %vm797_vm9, %v35_v47 }
 0x475   :  { %v1461_v54 = vpop.f32.mrb[14].mxu1 }
 0x476   :  { %v1742_v55 = vadd.f32 %v1461_v54, %v1317_v53  ;;  %v784_v56 = vpop.f32.mrb[15].mxu1  ;;  %v41_v54 = vld [vmem:[#allocation2 + $0x48] sm:$0xff] }
 0x477   :  { %v785_v57 = vadd.f32 %v1317_v53, %v784_v56  ;;  %v40_v53 = vld [vmem:[#allocation2 + $0x40] sm:$0xff]  ;;  %v42_v56 = vld [vmem:[#allocation2 + $0x50] sm:$0xf] }
 0x47b   :  { %v867_v58 = vpop.f32.mrb[16].mxu1 }
 0x47c   :  { %v871_v59 = vadd.f32 %v867_v58, %v785_v57  ;;  %v1470_v60 = vpop.f32.mrb[17].mxu1  ;;  %v1212_v58 = vld [vmem:[%s1772_s2] sm:$0x7]  ;;  %s1613_s2 = smov 124  }
 0x47e   :  { %1544 = vtanh.f32 %v871_v59  ;;  %v872_v8 = vsub.f32 0.0, %v871_v59 }
 0x480   :  { %v873_v62 = vmul.f32 1.442695, %v872_v8 }
 0x482   :  { %1546 = vpow2.f32 %v873_v62  ;;  %v1325_v62 = vld [vmem:[#allocation2 + $0x3f] ss:$0 sm:$0xff] }
 0x488   :  { %v1545_v61 = vpop.eup %1544 }
 0x489   :  { %881 = vrot.lane.b32.xlu0 %v1545_v61, %s1607_s0 }
 0x48c   :  { %v1547_v63 = vpop.eup %1546 }
 0x48d   :  { %v875_v0 = vadd.f32 1.0, %v1547_v63 }
 0x48f   :  { %1548 = vrcp.f32 %v875_v0 }
 0x499   :  { %v1549_v1 = vpop.eup %1548 }
 0x49a   :  { %v879_v4 = vmul.f32 0.0, %v1549_v1 }
 0x4fb   :  { %v882_v2 = vpop.permute.xlu0 %881 }
 0x4fc   :  { %v884_v3 = vmul.f32 %v1549_v1, %v882_v2 }
 0x4fe   :  { %886 = vrot.lane.b32.xlu0 %v884_v3, %s1608_s10 }
 0x570   :  { %v887_v5 = vpop.permute.xlu0 %886 }
 0x571   :  { %v889_v6 = vadd.f32 %v887_v5, %v879_v4 }
 0x573   :  { %1550 = vtanh.f32 %v889_v6  ;;  %v983_v25 = vrot.slane %v889_v6, 5 }
 0x57d   :  { %v1551_v7 = vpop.eup %1550 }
 0x57e   :  { %892 = vrot.lane.b32.xlu1 %v1551_v7, %s1608_s10  ;;  %v1611_v7 = vmov 1  }
 0x57f   :  { %1541 = vset.pattern.permute.xlu1 %v1611_v7 }
 0x5f0   :  { %v893_v10 = vpop.permute.xlu1 %892 }
 0x5f1   :  { %v895_v11 = vmul.f32 %v1549_v1, %v893_v10  ;;  %v1612_v10 = vmov 0  }
 0x5f2   :  { %1540 = vset.pattern.permute.xlu0 %v1612_v10 }
 0x5f3   :  { %897 = vrot.lane.b32.xlu1 %v895_v11, %s1609_s11  ;;  %v1109_v32 = vrot.slane %v895_v11, 2 }
 0x665   :  { %v898_v12 = vpop.permute.xlu1 %897 }
 0x666   :  { %1478 = vmatmul.mubr.msk.f32.vlgmr.msra.gmra.mrb[18].mxu0 %vm793_vm10, %v898_v12 }
 0x667   :  { %1495 = vmatprep.mubr.msk.f32.mxu0 %vm1604_vm1, %v1605_v9 }
 0x739   :  { %v967_v13 = vpop.f32.mrb[18].mxu0 }
 0x73a   :  { %v972_v14 = vrot.slane %v967_v13, 5  ;;  %v1479_v15 = vpop.f32.mrb[19].mxu0 }
 0x73c   :  { %v974_v16 = vadd.f32 %v972_v14, %v785_v57 }
 0x73e   :  { %1552 = vtanh.f32 %v974_v16  ;;  %v975_v18 = vsub.f32 0.0, %v974_v16 }
 0x740   :  { %v976_v19 = vmul.f32 1.442695, %v975_v18 }
 0x742   :  { %1554 = vpow2.f32 %v976_v19 }
 0x748   :  { %v1553_v17 = vpop.eup %1552 }
 0x749   :  { %987 = vrot.lane.b32.xlu0 %v1553_v17, %s1607_s0 }
 0x74c   :  { %v1555_v20 = vpop.eup %1554 }
 0x74d   :  { %v978_v21 = vadd.f32 1.0, %v1555_v20  ;;  %v1614_v20 = vmov 2  }
 0x74f   :  { %1556 = vrcp.f32 %v978_v21  ;;  %v1615_v21 = vmov 3  }
 0x759   :  { %v1557_v22 = vpop.eup %1556 }
 0x75a   :  { %v985_v26 = vmul.f32 %v1557_v22, %v983_v25 }
 0x7bb   :  { %v988_v23 = vpop.permute.xlu0 %987 }
 0x7bc   :  { %v990_v24 = vmul.f32 %v1557_v22, %v988_v23 }
 0x7be   :  { %992 = vrot.lane.b32.xlu1 %v990_v24, %s1608_s10 }
 0x830   :  { %v993_v27 = vpop.permute.xlu1 %992 }
 0x831   :  { %v995_v28 = vadd.f32 %v993_v27, %v985_v26  ;;  %v43_v26 = vld [vmem:[#allocation2 + $0x54] sm:$0xf] }
 0x833   :  { %1558 = vtanh.f32 %v995_v28  ;;  %v1090_v49 = vrot.slane %v995_v28, 5 }
 0x83d   :  { %v1559_v29 = vpop.eup %1558 }
 0x83e   :  { %998 = vrot.lane.b32.xlu0 %v1559_v29, %s1608_s10 }
 0x8b0   :  { %v999_v30 = vpop.permute.xlu0 %998 }
 0x8b1   :  { %v1001_v31 = vmul.f32 %v1557_v22, %v999_v30  ;;  %v1228_v22 = vlaneseq }
 0x8b3   :  { %v1003_v33 = vrot.slane %v1001_v31, 3  ;;  %v1111_v34 = vrot.slane %v1001_v31, 4  ;;  %v1229_v23 = vshrl.u32 %v1228_v22, 7 }
 0x8b5   :  { %1004 = vrot.lane.b32.xlu1 %v1003_v33, %s1609_s11  ;;  %v1117_v35 = vsel %vm1116_vm11, %v1109_v32, %v1111_v34  ;;  %v1239_v24 = vsub.s32 1, %v1229_v23  ;;  %v1230_v25 = vsub.s32 0, %v1229_v23  ;;  %v1249_v29 = vsub.s32 2, %v1229_v23 }
 0x8b6   :  { %v1259_v32 = vsub.s32 3, %v1229_v23 }
 0x8b7   :  { %v1240_v27 = vrot.slane %v43_v26, %v1239_v24  ;;  %v1231_v28 = vrot.slane %v43_v26, %v1230_v25 }
 0x927   :  { %v1005_v36 = vpop.permute.xlu1 %1004 }
 0x928   :  { %1487 = vmatmul.mubr.msk.f32.vlgmr.msra.gmra.mrb[18].mxu1 %vm793_vm10, %v1005_v36  ;;  %v1260_v36 = vrot.slane %v43_v26, %v1259_v32 }
 0x9fb   :  { %v1074_v37 = vpop.f32.mrb[18].mxu1 }
 0x9fc   :  { %v1079_v38 = vrot.slane %v1074_v37, 2  ;;  %v1488_v39 = vpop.f32.mrb[19].mxu1 }
 0x9fe   :  { %v1081_v40 = vadd.f32 %v1079_v38, %v1742_v55  ;;  %v1522_v55 = vpack.c.bf16 %v41_v54, %v40_v53 }
 0xa00   :  { %1560 = vtanh.f32 %v1081_v40  ;;  %v1082_v42 = vsub.f32 0.0, %v1081_v40  ;;  %1523 = vmatpush3.bf16.msra.mxu0 %v1522_v55 }
 0xa01   :  { %1493 = vmatprep.subr.mxu0 %v1605_v9 }
 0xa02   :  { %v1083_v43 = vmul.f32 1.442695, %v1082_v42 }
 0xa04   :  { %1562 = vpow2.f32 %v1083_v43  ;;  %1494 = vmatpush3.msk.msra.mxu0 %vm797_vm9, %v42_v56 }
 0xa0a   :  { %v1561_v41 = vpop.eup %1560 }
 0xa0b   :  { %1094 = vrot.lane.b32.xlu0 %v1561_v41, %s1607_s0 }
 0xa0e   :  { %v1563_v44 = vpop.eup %1562 }
 0xa0f   :  { %v1085_v45 = vadd.f32 1.0, %v1563_v44 }
 0xa11   :  { %1564 = vrcp.f32 %v1085_v45 }
 0xa1b   :  { %v1565_v46 = vpop.eup %1564 }
 0xa1c   :  { %v1092_v50 = vmul.f32 %v1565_v46, %v1090_v49 }
 0xa7d   :  { %v1095_v47 = vpop.permute.xlu0 %1094 }
 0xa7e   :  { %v1097_v48 = vmul.f32 %v1565_v46, %v1095_v47 }
 0xa80   :  { %1099 = vrot.lane.b32.xlu1 %v1097_v48, %s1608_s10 }
 0xaf2   :  { %v1100_v51 = vpop.permute.xlu1 %1099 }
 0xaf3   :  { %v1102_v52 = vadd.f32 %v1100_v51, %v1092_v50  ;;  %v1265_v50 = vand.u32 127, %v1228_v22 }
 0xaf5   :  { %1566 = vtanh.f32 %v1102_v52  ;;  %vm1266_vm13 = vcmp.ge.s32.totalorder %v1265_v50, 4  ;;  %vm1267_vm14 = vcmp.lt.s32.totalorder %v1265_v50, 8  ;;  %vm1269_vm15 = vcmp.ge.s32.totalorder %v1265_v50, 12 }
 0xaf6   :  { %vm1270_vm0 = vcmp.lt.s32.totalorder %v1265_v50, 16  ;;  %vm1268_vm1 = vmand %vm1266_vm13, %vm1267_vm14 }
 0xaf7   :  { %vm1271_vm2 = vmand %vm1269_vm15, %vm1270_vm0 }
 0xaf8   :  { %vm1272_vm3 = vmor %vm1268_vm1, %vm1271_vm2 }
 0xaff   :  { %v1567_v57 = vpop.eup %1566 }
 0xb00   :  { %1105 = vrot.lane.b32.xlu0 %v1567_v57, %s1608_s10 }
 0xb04   :  { %1214 = vrot.lane.b32.xlu0 %v1212_v58, %s1610_s14 }
 0xb72   :  { %v1106_v59 = vpop.permute.xlu0 %1105 }
 0xb73   :  { %v1108_v60 = vmul.f32 %v1565_v46, %v1106_v59 }
 0xb75   :  { %v1114_v61 = vrot.slane %v1108_v60, 6 }
 0xb76   :  { %v1215_v15 = vpop.permute.xlu0 %1214 }
 0xb77   :  { %v1119_v8 = vsel %vm1118_vm12, %v1117_v35, %v1114_v61  ;;  %v1250_v35 = vrot.slane %v43_v26, %v1249_v29 }
 0xb78   :  { %1125 = vrot.lane.b32.xlu1 %v1119_v8, %s1609_s11 }
 0xbea   :  { %v1126_v9 = vpop.permute.xlu1 %1125 }
 0xbeb   :  { %1496 = vmatmul.mubr.msk.f32.vlgmr.msra.gmra.mrb[20].mxu0 %vm793_vm10, %v1126_v9 }
 0xcbe   :  { %v1198_v63 = vpop.f32.mrb[20].mxu0 }
 0xcbf   :  { %v1199_v0 = vadd.f32 %v1325_v62, %v1198_v63  ;;  %v1497_v1 = vpop.f32.mrb[21].mxu0 }
 0xcc1   :  { %v1203_v2 = vand.u32 2147483647, %v1199_v0  ;;  %v1202_v12 = vmax.f32 %v1199_v0, 0.0 }
 0xcc3   :  { %v1204_v3 = vsub.f32 0.0, %v1203_v2 }
 0xcc5   :  { %v1205_v4 = vmul.f32 1.442695, %v1204_v3 }
 0xcc7   :  { %1568 = vpow2.f32 %v1205_v4 }
 0xcd1   :  { %v1569_v5 = vpop.eup %1568 }
 0xcd2   :  { %v1207_v6 = vadd.f32 1.0, %v1569_v5 }
 0xcd4   :  { %1570 = vlog2.f32 %v1207_v6 }
 0xcde   :  { %v1571_v11 = vpop.eup %1570 }
 0xcdf   :  { %v1209_v13 = vmul.f32 0.6931472, %v1571_v11 }
 0xce1   :  { %v1210_v14 = vadd.f32 %v1209_v13, %v1202_v12 }
 0xce3   :  { %v1211_v16 = vadd.f32 0.001, %v1210_v14 }
 0xce5   :  { %v1217_v17 = vmul.f32 %v1215_v15, %v1211_v16 }
 0xce7   :  { %1219 = vrot.lane.b32.xlu1 %v1217_v17, %s1613_s2 }
 0xd59   :  { %v1220_v18 = vpop.permute.xlu1 %1219 }
 0xd5a   :  { %v1222_v19 = vadd.f32 %v1220_v18, %v1199_v0 }
 0xd5c   :  { %1234 = vperm.xlu1 %1541, %v1222_v19   ;;  %1225 = vperm.xlu0 %1540, %v1222_v19  }
 0xd60   :  { %1542 = vset.pattern.permute.xlu1 %v1614_v20  ;;  %1543 = vset.pattern.permute.xlu0 %v1615_v21 }
 0xd61   :  { %1244 = vperm.xlu1 %1542, %v1222_v19   ;;  %1254 = vperm.xlu0 %1543, %v1222_v19  }
 0xddb   :  { %v1235_v30 = vpop.permute.xlu1 %1234  ;;  %v1226_v31 = vpop.permute.xlu0 %1225 }
 0xddc   :  { %v1241_v33 = vmul.f32 %v1240_v27, %v1235_v30  ;;  %v1232_v34 = vmul.f32 %v1231_v28, %v1226_v31 }
 0xdde   :  { %v1242_v39 = vadd.f32 %v1241_v33, %v1232_v34 }
 0xde0   :  { %v1245_v37 = vpop.permute.xlu1 %1244  ;;  %v1255_v38 = vpop.permute.xlu0 %1254 }
 0xde1   :  { %v1251_v40 = vmul.f32 %v1250_v35, %v1245_v37  ;;  %v1261_v42 = vmul.f32 %v1260_v36, %v1255_v38 }
 0xde3   :  { %v1252_v41 = vadd.f32 %v1251_v40, %v1242_v39 }
 0xde5   :  { %v1262_v43 = vadd.f32 %v1261_v42, %v1252_v41 }
 0xde7   :  { %v1263_v44 = vadd.f32 %v1262_v43, %v1199_v0 }
 0xde9   :  { %v1274_v45 = vand.u32 2147483647, %v1263_v44  ;;  %v1273_v52 = vmax.f32 %v1263_v44, 0.0 }
 0xdeb   :  { %v1275_v46 = vsub.f32 0.0, %v1274_v45 }
 0xded   :  { %v1276_v47 = vmul.f32 1.442695, %v1275_v46 }
 0xdef   :  { %1572 = vpow2.f32 %v1276_v47 }
 0xdf9   :  { %v1573_v48 = vpop.eup %1572 }
 0xdfa   :  { %v1278_v49 = vadd.f32 1.0, %v1573_v48 }
 0xdfc   :  { %1574 = vlog2.f32 %v1278_v49 }
 0xe06   :  { %v1575_v51 = vpop.eup %1574 }
 0xe07   :  { %v1280_v53 = vmul.f32 0.6931472, %v1575_v51 }
 0xe09   :  { %v1281_v54 = vadd.f32 %v1280_v53, %v1273_v52 }
 0xe0b   :  { %v1282_v55 = vadd.f32 0.001, %v1281_v54 }
 0xe0d   :  { %v1283_v56 = vsel %vm1272_vm3, %v1282_v55, %v1263_v44 }
 0xe0e   :  { %1284 = vst [vmem:[%s1773_s3] sm:$0x7] %v1283_v56 }
 0xe0f   :  { %1289 = vsyncpa [#allocation3], 1 }

</bundles_post_ra>
